<compile_context>
chip_gen: v7x
topology: tpu7x:2x2x1
jax: 0.10.0
libtpu: 0.0.40
codegen_flags: <defaults>
</compile_context>

<pallas_src>
import jax
import jax.numpy as jnp
from jax import lax
from jax.experimental import pallas as pl
from jax.experimental.pallas import tpu as pltpu

# ----------------------------- static config --------------------------------
N = 2
CIN = 4
COUT = 8
H = W = 16
KH = KW = 3
DIL = 2
PAD = 2
EPS = 1e-5

HO, WO = H // 2, W // 2
HWO = HO * WO                 # output pixels per batch element (64)
PM = N * HWO                  # pooled columns (128) — exactly one lane tile
M = 4 * PM                    # pre-pool columns, grouped by 2x2 pool position (512)
K1 = KH * KW * CIN            # raw im2col contraction dim (36)
K1P = 40                      # padded to a multiple of 8; row K1 is the all-ones bias row
NVEC = 4                      # packed per-channel vectors: [s1, t1, s2, t2]
CTR = (KH // 2) * KW + (KW // 2)   # center-tap index (4) -> im2col rows 16:20 == raw x


# ------------------------------- the kernel ---------------------------------
def basic_block_kernel(patches_ref, params_ref, out_ref):
    # patches_ref: (K1P, M)           im2col columns, pool-ordered; row K1 = ones
    # params_ref:  (2*COUT, K1P+NVEC) cols 0:K1P  = fused weight
    #                                  [ w1 | b1 ]   (rows 0:COUT)
    #                                  [ w2@center-tap | b2 ] (rows COUT:2*COUT)
    #                                  cols K1P: = [s1, t1, s2, t2] in rows 0:COUT
    # out_ref:     (COUT, PM)
    w = params_ref[:, 0:K1P]
    s1 = params_ref[0:COUT, K1P + 0:K1P + 1]
    t1 = params_ref[0:COUT, K1P + 1:K1P + 2]
    s2 = params_ref[0:COUT, K1P + 2:K1P + 3]
    t2 = params_ref[0:COUT, K1P + 3:K1P + 4]

    # ONE fused MXU matmul: rows 0:8 = conv1(x)+b1, rows 8:16 = conv2(x)+b2.
    # The split at row 8 is on an 8-sublane tile boundary -> free.
    full = jnp.dot(w, patches_ref[...], preferred_element_type=jnp.float32)
    c1 = full[0:COUT, :]
    res = full[COUT:2 * COUT, :]

    out = jnp.maximum(c1, 0.0)          # relu1
    out = out * s1 + t1                 # bn1 (eval mode)
    out = out + res                     # residual branch (1x1 conv, bias included)
    out = jnp.maximum(out, 0.0) * s2    # relu2 + bn2 scale (s2 may be negative ->
                                        # must stay before the max pool)

    # MaxPool2d(2): the 4 pool positions live in 4 lane-tile-aligned column
    # blocks of PM each -> 3 full-width VPU max ops, zero relayout.
    p = jnp.maximum(
        jnp.maximum(out[:, 0 * PM:1 * PM], out[:, 1 * PM:2 * PM]),
        jnp.maximum(out[:, 2 * PM:3 * PM], out[:, 3 * PM:4 * PM]))
    # bn2 shift commutes with max unconditionally -> applied on a single vreg.
    out_ref[...] = (p + t2).astype(out_ref.dtype)


# ------------------------------ JAX wrapper ----------------------------------
def _pool_order(a):
    """(L, N, H, W) -> (L, 4*N*HO*WO): columns grouped by 2x2 pool position."""
    L = a.shape[0]
    a = a.reshape(L, N, HO, 2, WO, 2)             # (L, n, oh, ph, ow, pw)
    a = jnp.transpose(a, (0, 3, 5, 1, 2, 4))      # (L, ph, pw, n, oh, ow)
    return a.reshape(L, M)


def basic_block_pallas(x_nchw, params):
    (w1, b1, w2, b2, g1, be1, rm1, rv1, g2, be2, rm2, rv2) = params
    f32 = jnp.float32
    x = x_nchw.astype(f32)                                        # (N, CIN, H, W)

    # im2col with channels-major rows: one transpose + pad, 9 shifted views.
    xc = jnp.transpose(x, (1, 0, 2, 3))                           # (CIN, N, H, W)
    xcp = jnp.pad(xc, ((0, 0), (0, 0), (PAD, PAD), (PAD, PAD)))   # (CIN, N, HP, WP)
    taps = [xcp[:, :, kh * DIL:kh * DIL + H, kw * DIL:kw * DIL + W]
            for kh in range(KH) for kw in range(KW)]              # 9 x (CIN, N, H, W)
    pat = jnp.stack(taps, axis=0).reshape(K1, N, H, W)            # (36, N, H, W)
    patches = _pool_order(pat)                                    # (36, M)
    # pad K to 40: one all-ones row (carries the conv biases) + zero rows
    patches = jnp.concatenate(
        [patches, jnp.ones((1, M), f32), jnp.zeros((K1P - K1 - 1, M), f32)],
        axis=0)                                                   # (K1P, M)

    # fused weight: conv1 rows on top, residual-conv rows (center tap) below.
    w1t = jnp.transpose(w1, (0, 2, 3, 1)).reshape(COUT, K1).astype(f32)  # (8, 36)
    w2t = w2[:, :, 0, 0].astype(f32)                                     # (8, 4)
    w_c1 = jnp.zeros((COUT, K1P), f32).at[:, 0:K1].set(w1t)
    w_c1 = w_c1.at[:, K1].set(b1.astype(f32))                     # ones-row col -> +b1
    w_rs = jnp.zeros((COUT, K1P), f32).at[:, CTR * CIN:(CTR + 1) * CIN].set(w2t)
    w_rs = w_rs.at[:, K1].set(b2.astype(f32))                     # ones-row col -> +b2
    w_cat = jnp.concatenate([w_c1, w_rs], axis=0)                 # (16, K1P)

    # fold BatchNorm (eval) into per-channel scale/shift and pack everything
    # into ONE parameter slab -> only 2 pallas_call inputs total.
    s1 = g1 / jnp.sqrt(rv1 + EPS)
    t1 = be1 - rm1 * s1
    s2 = g2 / jnp.sqrt(rv2 + EPS)
    t2 = be2 - rm2 * s2
    vec = jnp.stack([s1, t1, s2, t2], axis=1).astype(f32)          # (8, 4)
    vec16 = jnp.zeros((2 * COUT, NVEC), f32).at[0:COUT, :].set(vec)
    params_slab = jnp.concatenate([w_cat, vec16], axis=1)          # (16, K1P+4)

    out = pl.pallas_call(
        basic_block_kernel,
        out_shape=jax.ShapeDtypeStruct((COUT, PM), f32),
        in_specs=[pl.BlockSpec(memory_space=pltpu.MemorySpace.VMEM)] * 2,
        out_specs=pl.BlockSpec(memory_space=pltpu.MemorySpace.VMEM),
        cost_estimate=pl.CostEstimate(
            flops=2 * (2 * COUT) * K1P * M,
            transcendentals=0,
            bytes_accessed=4 * (K1P * M + 2 * COUT * (K1P + NVEC) + COUT * PM)),
    )(patches, params_slab)

    # (COUT, N*HO*WO) -> (N, COUT, HO, WO)
    return jnp.transpose(out.reshape(COUT, N, HO, WO), (1, 0, 2, 3))


# --------------------------- pure-JAX reference -------------------------------
def basic_block_ref(x_nchw, params):
    (w1, b1, w2, b2, g1, be1, rm1, rv1, g2, be2, rm2, rv2) = params
    dn = ('NCHW', 'OIHW', 'NCHW')
    out = lax.conv_general_dilated(
        x_nchw, w1, window_strides=(1, 1),
        padding=[(PAD, PAD), (PAD, PAD)],
        rhs_dilation=(DIL, DIL), dimension_numbers=dn)
    out = out + b1[None, :, None, None]
    out = jnp.maximum(out, 0.0)
    out = ((out - rm1[None, :, None, None]) / jnp.sqrt(rv1 + EPS)[None, :, None, None]
           * g1[None, :, None, None] + be1[None, :, None, None])
    res = lax.conv_general_dilated(x_nchw, w2, (1, 1), 'VALID',
                                   dimension_numbers=dn)
    res = res + b2[None, :, None, None]
    out = out + res
    out = jnp.maximum(out, 0.0)
    out = ((out - rm2[None, :, None, None]) / jnp.sqrt(rv2 + EPS)[None, :, None, None]
           * g2[None, :, None, None] + be2[None, :, None, None])
    out = lax.reduce_window(out, -jnp.inf, lax.max,
                            (1, 1, 2, 2), (1, 1, 2, 2), 'VALID')
    return out


if __name__ == "__main__":
    key = jax.random.PRNGKey(0)
    ks = jax.random.split(key, 12)
    x = jax.random.normal(ks[0], (N, CIN, H, W), jnp.float32)

    w1 = jax.random.normal(ks[1], (COUT, CIN, KH, KW), jnp.float32) * 0.1
    b1 = jax.random.normal(ks[2], (COUT,), jnp.float32) * 0.1
    w2 = jax.random.normal(ks[3], (COUT, CIN, 1, 1), jnp.float32) * 0.1
    b2 = jax.random.normal(ks[4], (COUT,), jnp.float32) * 0.1
    g1 = 1.0 + 0.1 * jax.random.normal(ks[5], (COUT,), jnp.float32)
    be1 = 0.1 * jax.random.normal(ks[6], (COUT,), jnp.float32)
    rm1 = 0.1 * jax.random.normal(ks[7], (COUT,), jnp.float32)
    rv1 = 1.0 + 0.1 * jax.random.uniform(ks[8], (COUT,), jnp.float32)
    g2 = 1.0 + 0.1 * jax.random.normal(ks[9], (COUT,), jnp.float32)
    be2 = 0.1 * jax.random.normal(ks[10], (COUT,), jnp.float32)
    rm2 = 0.1 * jax.random.normal(ks[11], (COUT,), jnp.float32)
    rv2 = 1.0 + 0.05 * jnp.ones((COUT,), jnp.float32)
    params = (w1, b1, w2, b2, g1, be1, rm1, rv1, g2, be2, rm2, rv2)

    fn = jax.jit(basic_block_pallas)
    y = jax.block_until_ready(fn(x, params))
    y_ref = jax.block_until_ready(basic_block_ref(x, params))

    assert y.shape == (N, COUT, HO, WO), y.shape
    if not bool(jnp.allclose(y, y_ref, rtol=1e-3, atol=1e-3)):
        raise AssertionError(
            f"mismatch vs reference, max abs diff = {jnp.max(jnp.abs(y - y_ref))}")
    print("KERNEL_OK")
</pallas_src>

<mosaic_0001>
module attributes {stable_mosaic.version = 11 : i64} {
  func.func @basic_block_kernel(%arg0: memref<40x512xf32, #tpu.memory_space<vmem>>, %arg1: memref<16x44xf32, #tpu.memory_space<vmem>>, %arg2: memref<8x128xf32, #tpu.memory_space<vmem>>) attributes {dimension_semantics = [], scalar_prefetch = 0 : i64, scratch_operands = 0 : i64, tpu.core_type = #tpu.core_type<tc>} {
    %c0 = arith.constant 0 : index
    %c0_0 = arith.constant 0 : index
    %0 = vector.load %arg1[%c0, %c0_0] : memref<16x44xf32, #tpu.memory_space<vmem>>, vector<16x40xf32>
    %c0_1 = arith.constant 0 : index
    %c40 = arith.constant 40 : index
    %1 = vector.load %arg1[%c0_1, %c40] : memref<16x44xf32, #tpu.memory_space<vmem>>, vector<8x1xf32>
    %c0_2 = arith.constant 0 : index
    %c41 = arith.constant 41 : index
    %2 = vector.load %arg1[%c0_2, %c41] : memref<16x44xf32, #tpu.memory_space<vmem>>, vector<8x1xf32>
    %c0_3 = arith.constant 0 : index
    %c42 = arith.constant 42 : index
    %3 = vector.load %arg1[%c0_3, %c42] : memref<16x44xf32, #tpu.memory_space<vmem>>, vector<8x1xf32>
    %c0_4 = arith.constant 0 : index
    %c43 = arith.constant 43 : index
    %4 = vector.load %arg1[%c0_4, %c43] : memref<16x44xf32, #tpu.memory_space<vmem>>, vector<8x1xf32>
    %c0_5 = arith.constant 0 : index
    %c0_6 = arith.constant 0 : index
    %5 = vector.load %arg0[%c0_5, %c0_6] : memref<40x512xf32, #tpu.memory_space<vmem>>, vector<40x512xf32>
    %cst = arith.constant dense<0.000000e+00> : vector<16x512xf32>
    %6 = tpu.matmul %0, %5, %cst {dimension_numbers = #tpu.dot_dimension_numbers<[1], [0], [0], [1], [0, 0, 1, 1], [], []>} : vector<16x40xf32>, vector<40x512xf32>, vector<16x512xf32> -> vector<16x512xf32>
    %7 = vector.extract_strided_slice %6 {offsets = [0, 0], sizes = [8, 512], strides = [1, 1]} : vector<16x512xf32> to vector<8x512xf32>
    %8 = vector.extract_strided_slice %6 {offsets = [8, 0], sizes = [8, 512], strides = [1, 1]} : vector<16x512xf32> to vector<8x512xf32>
    %cst_7 = arith.constant 0.000000e+00 : f32
    %9 = vector.broadcast %cst_7 : f32 to vector<8x512xf32>
    %10 = arith.maximumf %7, %9 : vector<8x512xf32>
    %11 = vector.broadcast %1 : vector<8x1xf32> to vector<8x512xf32>
    %12 = arith.mulf %10, %11 : vector<8x512xf32>
    %13 = vector.broadcast %2 : vector<8x1xf32> to vector<8x512xf32>
    %14 = arith.addf %12, %13 : vector<8x512xf32>
    %15 = arith.addf %14, %8 : vector<8x512xf32>
    %cst_8 = arith.constant 0.000000e+00 : f32
    %16 = vector.broadcast %cst_8 : f32 to vector<8x512xf32>
    %17 = arith.maximumf %15, %16 : vector<8x512xf32>
    %18 = vector.broadcast %3 : vector<8x1xf32> to vector<8x512xf32>
    %19 = arith.mulf %17, %18 : vector<8x512xf32>
    %20 = vector.extract_strided_slice %19 {offsets = [0, 0], sizes = [8, 128], strides = [1, 1]} : vector<8x512xf32> to vector<8x128xf32>
    %21 = vector.extract_strided_slice %19 {offsets = [0, 128], sizes = [8, 128], strides = [1, 1]} : vector<8x512xf32> to vector<8x128xf32>
    %22 = arith.maximumf %20, %21 : vector<8x128xf32>
    %23 = vector.extract_strided_slice %19 {offsets = [0, 256], sizes = [8, 128], strides = [1, 1]} : vector<8x512xf32> to vector<8x128xf32>
    %24 = vector.extract_strided_slice %19 {offsets = [0, 384], sizes = [8, 128], strides = [1, 1]} : vector<8x512xf32> to vector<8x128xf32>
    %25 = arith.maximumf %23, %24 : vector<8x128xf32>
    %26 = arith.maximumf %22, %25 : vector<8x128xf32>
    %27 = vector.broadcast %4 : vector<8x1xf32> to vector<8x128xf32>
    %28 = arith.addf %26, %27 : vector<8x128xf32>
    %c0_9 = arith.constant 0 : index
    %c0_10 = arith.constant 0 : index
    %29 = vector.load %arg2[%c0_9, %c0_10] : memref<8x128xf32, #tpu.memory_space<vmem>>, vector<8x128xf32>
    tpu.vector_store %arg2[%c0_9, %c0_10], %28 {strides = array<i32>} : memref<8x128xf32, #tpu.memory_space<vmem>>, vector<8x128xf32>,
    return
  }
}

</mosaic_0001>

<bundles_post_ra>
// kernel: basic_block_pallas.1
= control target key start
LH: loop header
LB: loop body
LE: loop exit
PB: predicated region body
PF: predicated region fallthrough
CT: control target
= control target key end

     0   :  { %v273_v3 = vmov 0.0   ;;  %v274_v8 = vmov 40   ;;  %v275_v9 = vmov 42   ;;  %vm33_vm0 = vcmask 326656   ;;  %s366_s0 = inlined_call_operand.vmem [shape: f32[40,512], index: 0, kind: input, shape index: {}]   ;;  %s367_s1 = inlined_call_operand.vmem [shape: f32[16,44], index: 1, kind: input, shape index: {}]   ;;  %s368_s2 = inlined_call_operand.vmem [shape: f32[8,128], index: 2, kind: output, shape index: {}]  }
   0x1   :  { %v14_v0 = vld [vmem:[%s366_s0 + $0x8] sm:$0xff]  ;;  %v16_v2 = vld [vmem:[%s366_s0 + $0x18] sm:$0xff]  ;;  %104 = vmatprep.mubr.f32.mxu0 %v273_v3  ;;  %181 = vmatprep.mubr.f32.mxu1 %v273_v3  ;;  %v13_v6 = vld [vmem:[%s366_s0] sm:$0xff]  ;;  %v276_v32 = vmov 41   ;;  %v277_v33 = vmov 43  }
   0x2   :  { %v18_v1 = vld [vmem:[%s366_s0 + $0x28] sm:$0xff]  ;;  %v20_v5 = vld [vmem:[%s366_s0 + $0x38] sm:$0xff]  ;;  %v17_v7 = vld [vmem:[%s366_s0 + $0x20] sm:$0xff]  ;;  %268 = vset.pattern.permute.xlu0 %v274_v8  ;;  %270 = vset.pattern.permute.xlu1 %v275_v9 }
   0x3   :  { %v247_v4 = vpack.c.bf16 %v18_v1, %v14_v0  ;;  %v255_v10 = vpack.c.bf16 %v20_v5, %v16_v2  ;;  %v249_v11 = vpack.c.bf16 %v17_v7, %v13_v6  ;;  %v15_v12 = vld [vmem:[%s366_s0 + $0x10] sm:$0xff]  ;;  %v22_v14 = vld [vmem:[%s366_s0 + $0x48] sm:$0xff]  ;;  %v24_v17 = vld [vmem:[%s366_s0 + $0x58] sm:$0xff] }
   0x4   :  { %v19_v13 = vld [vmem:[%s366_s0 + $0x30] sm:$0xff]  ;;  %v26_v16 = vld [vmem:[%s366_s0 + $0x68] sm:$0xff]  ;;  %v28_v18 = vld [vmem:[%s366_s0 + $0x78] sm:$0xff] }
   0x5   :  { %248 = vmatprep.subr.bf16.mxu0 %v247_v4  ;;  %v257_v15 = vpack.c.bf16 %v19_v13, %v15_v12  ;;  %256 = vmatprep.subr.bf16.mxu1 %v255_v10  ;;  %v251_v19 = vpack.c.bf16 %v26_v16, %v22_v14  ;;  %v259_v20 = vpack.c.bf16 %v28_v18, %v24_v17  ;;  %v21_v21 = vld [vmem:[%s366_s0 + $0x40] sm:$0xff]  ;;  %v23_v23 = vld [vmem:[%s366_s0 + $0x50] sm:$0xff]  ;;  %v30_v27 = vld [vmem:[%s366_s0 + $0x88] sm:$0xff] }
   0x6   :  { %250 = vmatpush1.bf16.msra.mxu0 %v249_v11  ;;  %v25_v22 = vld [vmem:[%s366_s0 + $0x60] sm:$0xff]  ;;  %v27_v25 = vld [vmem:[%s366_s0 + $0x70] sm:$0xff]  ;;  %v32_v29 = vld [vmem:[%s366_s0 + $0x98] sm:$0xff] }
   0x7   :  { %258 = vmatpush1.bf16.msra.mxu1 %v257_v15  ;;  %v253_v24 = vpack.c.bf16 %v25_v22, %v21_v21  ;;  %252 = vmatprep.subr.bf16.mxu0 %v251_v19  ;;  %v261_v26 = vpack.c.bf16 %v27_v25, %v23_v23  ;;  %v11_v28 = vld [vmem:[%s367_s1] sm:$0xff]  ;;  %v31_v31 = vld [vmem:[%s366_s0 + $0x90] sm:$0xff]  ;;  %v12_v34 = vld [vmem:[%s367_s1 + $0x8] sm:$0xff] }
   0x8   :  { %260 = vmatprep.subr.bf16.mxu1 %v259_v20  ;;  %199 = vperm.xlu0 %268, %v11_v28   ;;  %v29_v30 = vld [vmem:[%s366_s0 + $0x80] sm:$0xff] }
   0x9   :  { %223 = vperm.xlu1 %270, %v11_v28  }
   0xa   :  { %254 = vmatpush1.bf16.msra.mxu0 %v253_v24 }
   0xb   :  { %262 = vmatpush1.bf16.msra.mxu1 %v261_v26  ;;  %48 = vmatprep.subr.mxu0 %v30_v27 }
   0xc   :  { %125 = vmatprep.subr.mxu1 %v32_v29  ;;  %269 = vset.pattern.permute.xlu0 %v276_v32 }
   0xd   :  { %271 = vset.pattern.permute.xlu1 %v277_v33  ;;  %207 = vperm.xlu0 %269, %v11_v28  }
   0xe   :  { %49 = vmatpush1.msra.mxu0 %v29_v30  ;;  %234 = vperm.xlu1 %271, %v11_v28  }
   0xf   :  { %126 = vmatpush1.msra.mxu1 %v31_v31  ;;  %243 = vmatmul.mubr.msk.f32.vlgmr.msra.gmra.mrb[0].mxu0 %vm33_vm0, %v11_v28 }
  0x10   :  { %245 = vmatmul.mubr.msk.f32.vlgmr.msra.gmra.mrb[0].mxu1 %vm33_vm0, %v11_v28  ;;  %110 = vmatprep.mubr.f32.mxu0 %v273_v3 }
  0x11   :  { %187 = vmatprep.mubr.f32.mxu1 %v273_v3  ;;  %272 = vset.pattern.permute.xlu0 %v277_v33 }
  0x13   :  { %244 = vmatmul.mubr.msk.f32.gmra.mrb[2].mxu0 %vm33_vm0, %v12_v34 }
  0x14   :  { %246 = vmatmul.mubr.msk.f32.gmra.mrb[2].mxu1 %vm33_vm0, %v12_v34 }
  0x87   :  { %v200_v35 = vpop.permute.xlu0 %199 }
  0x88   :  { %v224_v60 = vpop.permute.xlu1 %223 }
  0x8c   :  { %v208_v43 = vpop.permute.xlu0 %207 }
  0x8d   :  { %v235_v8 = vpop.permute.xlu1 %234 }
  0xe2   :  { %v106_v36 = vpop.f32.mrb[0].mxu0 }
  0xe3   :  { %v194_v37 = vmax.f32 %v106_v36, 0.0  ;;  %v183_v38 = vpop.f32.mrb[0].mxu1  ;;  %v108_v39 = vpop.f32.mrb[1].mxu0 }
  0xe4   :  { %v196_v40 = vmax.f32 %v183_v38, 0.0  ;;  %v195_v41 = vmax.f32 %v108_v39, 0.0  ;;  %v185_v42 = vpop.f32.mrb[1].mxu1 }
  0xe5   :  { %v202_v44 = vmul.f32 %v200_v35, %v194_v37  ;;  %v197_v45 = vmax.f32 %v185_v42, 0.0 }
  0xe6   :  { %v204_v46 = vmul.f32 %v200_v35, %v196_v40  ;;  %v203_v47 = vmul.f32 %v200_v35, %v195_v41  ;;  %v112_v48 = vpop.f32.mrb[2].mxu0 }
  0xe7   :  { %v205_v49 = vmul.f32 %v200_v35, %v197_v45  ;;  %v210_v50 = vadd.f32 %v208_v43, %v202_v44  ;;  %v189_v51 = vpop.f32.mrb[2].mxu1  ;;  %v114_v52 = vpop.f32.mrb[3].mxu0 }
  0xe8   :  { %v212_v53 = vadd.f32 %v208_v43, %v204_v46  ;;  %v211_v54 = vadd.f32 %v208_v43, %v203_v47  ;;  %v191_v55 = vpop.f32.mrb[3].mxu1 }
  0xe9   :  { %v214_v56 = vadd.f32 %v210_v50, %v112_v48  ;;  %v213_v57 = vadd.f32 %v208_v43, %v205_v49 }
  0xea   :  { %v216_v58 = vadd.f32 %v212_v53, %v189_v51  ;;  %v215_v59 = vadd.f32 %v211_v54, %v114_v52 }
  0xeb   :  { %v218_v61 = vmax.f32 %v214_v56, 0.0  ;;  %v217_v62 = vadd.f32 %v213_v57, %v191_v55 }
  0xec   :  { %v220_v63 = vmax.f32 %v216_v58, 0.0  ;;  %v219_v0 = vmax.f32 %v215_v59, 0.0 }
  0xed   :  { %v221_v1 = vmax.f32 %v217_v62, 0.0  ;;  %v226_v2 = vmul.f32 %v224_v60, %v218_v61 }
  0xee   :  { %v227_v3 = vmul.f32 %v224_v60, %v219_v0  ;;  %v228_v4 = vmul.f32 %v224_v60, %v220_v63 }
  0xef   :  { %v229_v5 = vmul.f32 %v224_v60, %v221_v1 }
  0xf0   :  { %v230_v6 = vmax.f32 %v226_v2, %v227_v3 }
  0xf1   :  { %v231_v7 = vmax.f32 %v228_v4, %v229_v5 }
  0xf3   :  { %v232_v9 = vmax.f32 %v230_v6, %v231_v7 }
  0xf5   :  { %v237_v10 = vadd.f32 %v235_v8, %v232_v9 }
  0xf7   :  { %238 = vst [vmem:[%s368_s2] sm:$0xff] %v237_v10 }

</bundles_post_ra>
